<compile_context>
chip_gen: v5e
topology: v5e:2x2
jax: 0.10.0
libtpu: 0.0.40
codegen_flags: <defaults>
</compile_context>

<pallas_src>
import functools

import jax
import jax.numpy as jnp
from jax.experimental import pallas as pl
from jax.experimental.pallas import tpu as pltpu

BN_EPS = 1e-5
LANE = 128


def _round_up(n, m):
    return (n + m - 1) // m * m


# ------------------------------ fused kernel ------------------------------- #

def _bn_relu(y):
    # BatchNorm1d train mode (biased batch variance, gamma=1, beta=0) + ReLU.
    # Two-pass variance (centered) to avoid cancellation.
    mean = jnp.mean(y, axis=0, keepdims=True)
    c = y - mean
    var = jnp.mean(c * c, axis=0, keepdims=True)
    return jnp.maximum(c * jax.lax.rsqrt(var + BN_EPS), 0.0)


def _bn_relu_two_groups(y, b):
    # Rows [0:b) and [b:2b) are two independent decoder passes stacked on the
    # sublane axis; BN stats are computed per group (matches two separate
    # decoder calls exactly).
    return jnp.concatenate([_bn_relu(y[:b]), _bn_relu(y[b:])], axis=0)


def _vae_fused_kernel(img_ref,
                      w0_ref, b0_ref,        # encoder linears[0]          (FP, H2P)
                      wh0_ref, bh0_ref,      # mu/logvar 1st lin, lane-cat (H2P, H2P)
                      wh1_ref, bh1_ref,      # mu/logvar 2nd lin, blk-diag (H2P, 2*LP)
                      wd1_ref, bd1_ref,      # decoder linear1             (LP, HP)
                      wd2_ref, bd2_ref,      # decoder linear2             (HP, H2P)
                      wdf_ref, bdf_ref,      # decoder final linear        (H2P, FP)
                      eps_ref,               # (2B, LP): rows [0:B) main, [B:2B) loss
                      xrec_ref, loss_ref):
    x = img_ref[...]                                              # (B, FP) f32
    B = x.shape[0]
    LP = wd1_ref.shape[0]

    def lin(a, w_ref, b_ref):
        # bf16 MXU matmul with f32 accumulation; bias add in f32.
        return jnp.dot(a.astype(jnp.bfloat16), w_ref[...],
                       preferred_element_type=jnp.float32) + b_ref[...]

    # ---- encoder (deterministic; shared by forward and forward_loss) ----
    temp = _bn_relu(lin(x, w0_ref, b0_ref))                       # (B, H2P)
    heads = _bn_relu(lin(temp, wh0_ref, bh0_ref))                 # (B, H2P) = [mu_h|lv_h|0]
    mulv = lin(heads, wh1_ref, bh1_ref)                           # (B, 2*LP) = [mu|logvar]
    mu = mulv[:, :LP]
    logvar = mulv[:, LP:]
    std = jnp.exp(0.5 * logvar)

    # ---- reparameterize: two independent eps draws, stacked on sublanes ----
    z = (jnp.concatenate([mu, mu], axis=0)
         + jnp.concatenate([std, std], axis=0) * eps_ref[...])    # (2B, LP)

    # ---- decoder: both passes in one set of matmuls, per-half BN stats ----
    h = _bn_relu_two_groups(lin(z, wd1_ref, bd1_ref), B)          # (2B, HP)
    h = _bn_relu_two_groups(lin(h, wd2_ref, bd2_ref), B)          # (2B, H2P)
    xr = lin(h, wdf_ref, bdf_ref)                                 # (2B, FP)

    xrec_ref[...] = xr[:B]                                        # main-pass reconstruction
    x_rec2 = xr[B:]                                               # forward_loss reconstruction

    # ---- loss: KL + sum-reduction MSE (padded lanes contribute exactly 0) ----
    kl = -0.5 * jnp.sum(1.0 + logvar - mu * mu - jnp.exp(logvar))
    diff = x_rec2 - x
    loss_ref[0, 0] = kl + jnp.sum(diff * diff)


def _full_spec(shape):
    return pl.BlockSpec(shape, lambda: (0,) * len(shape))


def vae_pallas_call(image_pad, packed, eps_pad):
    B, FP = image_pad.shape
    (w0p, _, wh0p, _, wh1p, _, wd1p, _, wd2p, _, wdfp, _) = packed
    ins = (image_pad,) + tuple(packed) + (eps_pad,)

    # Advisory cost hint for XLA's scheduler around the opaque custom call.
    mm = [(B, w0p.shape[0], w0p.shape[1]),
          (B, wh0p.shape[0], wh0p.shape[1]),
          (B, wh1p.shape[0], wh1p.shape[1]),
          (2 * B, wd1p.shape[0], wd1p.shape[1]),
          (2 * B, wd2p.shape[0], wd2p.shape[1]),
          (2 * B, wdfp.shape[0], wdfp.shape[1])]
    flops = sum(2 * m * k * n for m, k, n in mm)
    bytes_accessed = sum(int(a.size) * a.dtype.itemsize for a in ins) + B * FP * 4 + 4
    transcendentals = 2 * B * wh1p.shape[1]

    x_rec, loss = pl.pallas_call(
        _vae_fused_kernel,
        out_shape=(
            jax.ShapeDtypeStruct((B, FP), jnp.float32),
            jax.ShapeDtypeStruct((1, 1), jnp.float32),
        ),
        in_specs=[_full_spec(a.shape) for a in ins],
        out_specs=(
            _full_spec((B, FP)),
            pl.BlockSpec(memory_space=pltpu.MemorySpace.SMEM),
        ),
        cost_estimate=pl.CostEstimate(flops=flops,
                                      transcendentals=transcendentals,
                                      bytes_accessed=bytes_accessed),
    )(*ins)
    return x_rec, loss[0, 0]


# ------------------------------ parameter init ----------------------------- #

def _init_linear(key, in_f, out_f):
    # PyTorch-style uniform(-1/sqrt(in), 1/sqrt(in)); W stored as (in, out).
    kw, kb = jax.random.split(key)
    bound = 1.0 / jnp.sqrt(jnp.float32(in_f))
    w = jax.random.uniform(kw, (in_f, out_f), jnp.float32, -bound, bound)
    b = jax.random.uniform(kb, (1, out_f), jnp.float32, -bound, bound)
    return w, b


def _pad2(x, rows, cols, dtype):
    out = jnp.zeros((rows, cols), dtype)
    return out.at[:x.shape[0], :x.shape[1]].set(x.astype(dtype))


def make_params(key, latent_dim, hidden_dim, image_channels, image_size):
    """Returns (packed, raw): lane-padded bf16 kernel weights + raw reference weights.

    Dead PyTorch parameters (encoder.linears[3..5], encoder.latent) are dropped:
    their result is discarded in VAE.forward.
    """
    F_dim = image_size * image_size * image_channels
    H, L = hidden_dim, latent_dim
    FP = _round_up(F_dim, LANE)
    H2P = _round_up(2 * H, LANE)
    HP = _round_up(H, LANE)
    LP = LANE                      # latent slab padded to one full lane tile
    assert L <= LP and 2 * H <= H2P

    keys = jax.random.split(key, 8)
    w0, b0 = _init_linear(keys[0], F_dim, 2 * H)      # encoder linears[0]
    w_mu0, b_mu0 = _init_linear(keys[1], 2 * H, H)    # get_mu[0]
    w_mu3, b_mu3 = _init_linear(keys[2], H, L)        # get_mu[3]
    w_lv0, b_lv0 = _init_linear(keys[3], 2 * H, H)    # get_logvar[0]
    w_lv3, b_lv3 = _init_linear(keys[4], H, L)        # get_logvar[3]
    wd1, bd1 = _init_linear(keys[5], L, H)            # decoder linear1
    wd2, bd2 = _init_linear(keys[6], H, 2 * H)        # decoder linear2
    wdf, bdf = _init_linear(keys[7], 2 * H, F_dim)    # decoder final

    bf16, f32 = jnp.bfloat16, jnp.float32

    w0p = _pad2(w0, FP, H2P, bf16)
    b0p = _pad2(b0, 1, H2P, f32)

    # mu/logvar heads: lane-concat first linears, block-diagonal second linears.
    wh0p = jnp.zeros((H2P, H2P), bf16)
    wh0p = wh0p.at[:2 * H, :H].set(w_mu0.astype(bf16))
    wh0p = wh0p.at[:2 * H, H:2 * H].set(w_lv0.astype(bf16))
    bh0p = jnp.zeros((1, H2P), f32).at[:, :H].set(b_mu0).at[:, H:2 * H].set(b_lv0)

    wh1p = jnp.zeros((H2P, 2 * LP), bf16)
    wh1p = wh1p.at[:H, :L].set(w_mu3.astype(bf16))
    wh1p = wh1p.at[H:2 * H, LP:LP + L].set(w_lv3.astype(bf16))
    bh1p = jnp.zeros((1, 2 * LP), f32).at[:, :L].set(b_mu3).at[:, LP:LP + L].set(b_lv3)

    wd1p = _pad2(wd1, LP, HP, bf16);   bd1p = _pad2(bd1, 1, HP, f32)
    wd2p = _pad2(wd2, HP, H2P, bf16);  bd2p = _pad2(bd2, 1, H2P, f32)
    wdfp = _pad2(wdf, H2P, FP, bf16);  bdfp = _pad2(bdf, 1, FP, f32)

    packed = (w0p, b0p, wh0p, bh0p, wh1p, bh1p, wd1p, bd1p, wd2p, bd2p, wdfp, bdfp)
    raw = dict(w0=w0.astype(bf16), b0=b0,
               w_mu0=w_mu0.astype(bf16), b_mu0=b_mu0, w_mu3=w_mu3.astype(bf16), b_mu3=b_mu3,
               w_lv0=w_lv0.astype(bf16), b_lv0=b_lv0, w_lv3=w_lv3.astype(bf16), b_lv3=b_lv3,
               wd1=wd1.astype(bf16), bd1=bd1, wd2=wd2.astype(bf16), bd2=bd2,
               wdf=wdf.astype(bf16), bdf=bdf)
    return packed, raw


# ------------------------------ model forward ------------------------------ #

def vae_forward(packed, latent_dim, image, rng_key):
    """Mirrors VAE.forward: returns (x_reconstruct, loss).

    PyTorch runs encoder+decoder twice (forward + forward_loss) with independent
    eps draws; the deterministic encoder is computed once, both eps draws and
    both decoder passes (stacked) are kept.
    """
    B = image.shape[0]
    FP = packed[0].shape[0]
    LP = packed[6].shape[0]
    x = image.reshape(B, -1).astype(jnp.float32)
    F_dim = x.shape[1]
    x_pad = jnp.zeros((B, FP), jnp.float32).at[:, :F_dim].set(x)

    k1, k2 = jax.random.split(rng_key)
    e_main = jax.random.normal(k1, (B, latent_dim), jnp.float32)
    e_loss = jax.random.normal(k2, (B, latent_dim), jnp.float32)
    eps_pad = jnp.zeros((2 * B, LP), jnp.float32)
    eps_pad = eps_pad.at[:B, :latent_dim].set(e_main).at[B:, :latent_dim].set(e_loss)

    x_rec_pad, loss = vae_pallas_call(x_pad, packed, eps_pad)
    return x_rec_pad[:, :F_dim], loss


# -------------------------- pure-JAX reference ------------------------------ #

def _ref_forward(raw, latent_dim, image, rng_key):
    B = image.shape[0]
    x = image.reshape(B, -1).astype(jnp.float32)

    def lin(a, w, b):
        return jnp.dot(a.astype(jnp.bfloat16), w, preferred_element_type=jnp.float32) + b

    def bn_relu(y):
        m = jnp.mean(y, axis=0, keepdims=True)
        c = y - m
        v = jnp.mean(c * c, axis=0, keepdims=True)
        return jnp.maximum(c * jax.lax.rsqrt(v + BN_EPS), 0.0)

    temp = bn_relu(lin(x, raw["w0"], raw["b0"]))
    mu = lin(bn_relu(lin(temp, raw["w_mu0"], raw["b_mu0"])), raw["w_mu3"], raw["b_mu3"])
    logvar = lin(bn_relu(lin(temp, raw["w_lv0"], raw["b_lv0"])), raw["w_lv3"], raw["b_lv3"])
    std = jnp.exp(0.5 * logvar)

    k1, k2 = jax.random.split(rng_key)
    e1 = jax.random.normal(k1, (B, latent_dim), jnp.float32)
    e2 = jax.random.normal(k2, (B, latent_dim), jnp.float32)

    def decode(z):
        h = bn_relu(lin(z, raw["wd1"], raw["bd1"]))
        h = bn_relu(lin(h, raw["wd2"], raw["bd2"]))
        return lin(h, raw["wdf"], raw["bdf"])

    x_rec = decode(mu + std * e1)
    x_rec2 = decode(mu + std * e2)
    kl = -0.5 * jnp.sum(1.0 + logvar - mu * mu - jnp.exp(logvar))
    mse = jnp.sum((x_rec2 - x) ** 2)
    return x_rec, kl + mse


# ---------------------------------- main ----------------------------------- #

if __name__ == "__main__":
    latent_dim = 8
    hidden_dim = 32
    image_channels = 1
    image_size = 8
    batch = 8   # full sublane tile; BN uses the full batch (PyTorch-exact stats)

    root = jax.random.PRNGKey(0)
    k_params, k_data, k_eps = jax.random.split(root, 3)

    packed, raw = make_params(k_params, latent_dim, hidden_dim, image_channels, image_size)
    image = jax.random.normal(
        k_data, (batch, image_channels, image_size, image_size), dtype=jnp.float32)

    fwd = jax.jit(functools.partial(vae_forward, packed, latent_dim))
    x_reconstruct, loss = fwd(image, k_eps)
    jax.block_until_ready((x_reconstruct, loss))

    F_dim = image_channels * image_size * image_size
    assert x_reconstruct.shape == (batch, F_dim)
    assert loss.shape == ()

    x_ref, loss_ref = _ref_forward(raw, latent_dim, image, k_eps)
    assert jnp.allclose(x_reconstruct, x_ref, rtol=5e-3, atol=5e-3), "x_rec mismatch"
    assert jnp.allclose(loss, loss_ref, rtol=5e-3, atol=1e-1), "loss mismatch"

    print("KERNEL_OK")
</pallas_src>

<mosaic_0001>
module attributes {stable_mosaic.version = 11 : i64} {
  func.func @_vae_fused_kernel(%arg0: memref<8x128xf32, #tpu.memory_space<vmem>>, %arg1: memref<128x128xbf16, #tpu.memory_space<vmem>>, %arg2: memref<1x128xf32, #tpu.memory_space<vmem>>, %arg3: memref<128x128xbf16, #tpu.memory_space<vmem>>, %arg4: memref<1x128xf32, #tpu.memory_space<vmem>>, %arg5: memref<128x256xbf16, #tpu.memory_space<vmem>>, %arg6: memref<1x256xf32, #tpu.memory_space<vmem>>, %arg7: memref<128x128xbf16, #tpu.memory_space<vmem>>, %arg8: memref<1x128xf32, #tpu.memory_space<vmem>>, %arg9: memref<128x128xbf16, #tpu.memory_space<vmem>>, %arg10: memref<1x128xf32, #tpu.memory_space<vmem>>, %arg11: memref<128x128xbf16, #tpu.memory_space<vmem>>, %arg12: memref<1x128xf32, #tpu.memory_space<vmem>>, %arg13: memref<16x128xf32, #tpu.memory_space<vmem>>, %arg14: memref<8x128xf32, #tpu.memory_space<vmem>>, %arg15: memref<1x1xf32, #tpu.memory_space<smem>>) attributes {dimension_semantics = [], scalar_prefetch = 0 : i64, scratch_operands = 0 : i64, tpu.core_type = #tpu.core_type<tc>} {
    %c0 = arith.constant 0 : index
    %c0_0 = arith.constant 0 : index
    %0 = vector.load %arg0[%c0, %c0_0] : memref<8x128xf32, #tpu.memory_space<vmem>>, vector<8x128xf32>
    %1 = arith.truncf %0 : vector<8x128xf32> to vector<8x128xbf16>
    %c0_1 = arith.constant 0 : index
    %c0_2 = arith.constant 0 : index
    %2 = vector.load %arg1[%c0_1, %c0_2] : memref<128x128xbf16, #tpu.memory_space<vmem>>, vector<128x128xbf16>
    %cst = arith.constant dense<0.000000e+00> : vector<8x128xf32>
    %3 = tpu.matmul %1, %2, %cst {dimension_numbers = #tpu.dot_dimension_numbers<[1], [0], [0], [1], [0, 0, 1, 1], [], []>} : vector<8x128xbf16>, vector<128x128xbf16>, vector<8x128xf32> -> vector<8x128xf32>
    %c0_3 = arith.constant 0 : index
    %c0_4 = arith.constant 0 : index
    %4 = vector.load %arg2[%c0_3, %c0_4] : memref<1x128xf32, #tpu.memory_space<vmem>>, vector<1x128xf32>
    %5 = vector.broadcast %4 : vector<1x128xf32> to vector<8x128xf32>
    %6 = arith.addf %3, %5 : vector<8x128xf32>
    %cst_5 = arith.constant dense<0.000000e+00> : vector<128xf32>
    %7 = vector.multi_reduction <add>, %6, %cst_5 [0] : vector<8x128xf32> to vector<128xf32>
    %8 = vector.shape_cast %7 : vector<128xf32> to vector<1x128xf32>
    %cst_6 = arith.constant 8.000000e+00 : f32
    %9 = vector.broadcast %cst_6 : f32 to vector<1x128xf32>
    %10 = arith.divf %8, %9 : vector<1x128xf32>
    %11 = vector.broadcast %10 : vector<1x128xf32> to vector<8x128xf32>
    %12 = arith.subf %6, %11 : vector<8x128xf32>
    %13 = arith.mulf %12, %12 : vector<8x128xf32>
    %cst_7 = arith.constant dense<0.000000e+00> : vector<128xf32>
    %14 = vector.multi_reduction <add>, %13, %cst_7 [0] : vector<8x128xf32> to vector<128xf32>
    %15 = vector.shape_cast %14 : vector<128xf32> to vector<1x128xf32>
    %cst_8 = arith.constant 8.000000e+00 : f32
    %16 = vector.broadcast %cst_8 : f32 to vector<1x128xf32>
    %17 = arith.divf %15, %16 : vector<1x128xf32>
    %cst_9 = arith.constant 9.99999974E-6 : f32
    %18 = vector.broadcast %cst_9 : f32 to vector<1x128xf32>
    %19 = arith.addf %17, %18 : vector<1x128xf32>
    %20 = math.rsqrt %19 : vector<1x128xf32>
    %21 = vector.broadcast %20 : vector<1x128xf32> to vector<8x128xf32>
    %22 = arith.mulf %12, %21 : vector<8x128xf32>
    %cst_10 = arith.constant 0.000000e+00 : f32
    %23 = vector.broadcast %cst_10 : f32 to vector<8x128xf32>
    %24 = arith.maximumf %22, %23 : vector<8x128xf32>
    %25 = arith.truncf %24 : vector<8x128xf32> to vector<8x128xbf16>
    %c0_11 = arith.constant 0 : index
    %c0_12 = arith.constant 0 : index
    %26 = vector.load %arg3[%c0_11, %c0_12] : memref<128x128xbf16, #tpu.memory_space<vmem>>, vector<128x128xbf16>
    %cst_13 = arith.constant dense<0.000000e+00> : vector<8x128xf32>
    %27 = tpu.matmul %25, %26, %cst_13 {dimension_numbers = #tpu.dot_dimension_numbers<[1], [0], [0], [1], [0, 0, 1, 1], [], []>} : vector<8x128xbf16>, vector<128x128xbf16>, vector<8x128xf32> -> vector<8x128xf32>
    %c0_14 = arith.constant 0 : index
    %c0_15 = arith.constant 0 : index
    %28 = vector.load %arg4[%c0_14, %c0_15] : memref<1x128xf32, #tpu.memory_space<vmem>>, vector<1x128xf32>
    %29 = vector.broadcast %28 : vector<1x128xf32> to vector<8x128xf32>
    %30 = arith.addf %27, %29 : vector<8x128xf32>
    %cst_16 = arith.constant dense<0.000000e+00> : vector<128xf32>
    %31 = vector.multi_reduction <add>, %30, %cst_16 [0] : vector<8x128xf32> to vector<128xf32>
    %32 = vector.shape_cast %31 : vector<128xf32> to vector<1x128xf32>
    %cst_17 = arith.constant 8.000000e+00 : f32
    %33 = vector.broadcast %cst_17 : f32 to vector<1x128xf32>
    %34 = arith.divf %32, %33 : vector<1x128xf32>
    %35 = vector.broadcast %34 : vector<1x128xf32> to vector<8x128xf32>
    %36 = arith.subf %30, %35 : vector<8x128xf32>
    %37 = arith.mulf %36, %36 : vector<8x128xf32>
    %cst_18 = arith.constant dense<0.000000e+00> : vector<128xf32>
    %38 = vector.multi_reduction <add>, %37, %cst_18 [0] : vector<8x128xf32> to vector<128xf32>
    %39 = vector.shape_cast %38 : vector<128xf32> to vector<1x128xf32>
    %cst_19 = arith.constant 8.000000e+00 : f32
    %40 = vector.broadcast %cst_19 : f32 to vector<1x128xf32>
    %41 = arith.divf %39, %40 : vector<1x128xf32>
    %cst_20 = arith.constant 9.99999974E-6 : f32
    %42 = vector.broadcast %cst_20 : f32 to vector<1x128xf32>
    %43 = arith.addf %41, %42 : vector<1x128xf32>
    %44 = math.rsqrt %43 : vector<1x128xf32>
    %45 = vector.broadcast %44 : vector<1x128xf32> to vector<8x128xf32>
    %46 = arith.mulf %36, %45 : vector<8x128xf32>
    %cst_21 = arith.constant 0.000000e+00 : f32
    %47 = vector.broadcast %cst_21 : f32 to vector<8x128xf32>
    %48 = arith.maximumf %46, %47 : vector<8x128xf32>
    %49 = arith.truncf %48 : vector<8x128xf32> to vector<8x128xbf16>
    %c0_22 = arith.constant 0 : index
    %c0_23 = arith.constant 0 : index
    %50 = vector.load %arg5[%c0_22, %c0_23] : memref<128x256xbf16, #tpu.memory_space<vmem>>, vector<128x256xbf16>
    %cst_24 = arith.constant dense<0.000000e+00> : vector<8x256xf32>
    %51 = tpu.matmul %49, %50, %cst_24 {dimension_numbers = #tpu.dot_dimension_numbers<[1], [0], [0], [1], [0, 0, 1, 1], [], []>} : vector<8x128xbf16>, vector<128x256xbf16>, vector<8x256xf32> -> vector<8x256xf32>
    %c0_25 = arith.constant 0 : index
    %c0_26 = arith.constant 0 : index
    %52 = vector.load %arg6[%c0_25, %c0_26] : memref<1x256xf32, #tpu.memory_space<vmem>>, vector<1x256xf32>
    %53 = vector.broadcast %52 : vector<1x256xf32> to vector<8x256xf32>
    %54 = arith.addf %51, %53 : vector<8x256xf32>
    %55 = vector.extract_strided_slice %54 {offsets = [0, 0], sizes = [8, 128], strides = [1, 1]} : vector<8x256xf32> to vector<8x128xf32>
    %56 = vector.extract_strided_slice %54 {offsets = [0, 128], sizes = [8, 128], strides = [1, 1]} : vector<8x256xf32> to vector<8x128xf32>
    %cst_27 = arith.constant 5.000000e-01 : f32
    %57 = vector.broadcast %cst_27 : f32 to vector<8x128xf32>
    %58 = arith.mulf %57, %56 : vector<8x128xf32>
    %59 = math.exp %58 : vector<8x128xf32>
    %60 = tpu.concatenate %55, %55 in 0 : vector<8x128xf32>, vector<8x128xf32> -> vector<16x128xf32>
    %61 = tpu.concatenate %59, %59 in 0 : vector<8x128xf32>, vector<8x128xf32> -> vector<16x128xf32>
    %c0_28 = arith.constant 0 : index
    %c0_29 = arith.constant 0 : index
    %62 = vector.load %arg13[%c0_28, %c0_29] : memref<16x128xf32, #tpu.memory_space<vmem>>, vector<16x128xf32>
    %63 = arith.mulf %61, %62 : vector<16x128xf32>
    %64 = arith.addf %60, %63 : vector<16x128xf32>
    %65 = arith.truncf %64 : vector<16x128xf32> to vector<16x128xbf16>
    %c0_30 = arith.constant 0 : index
    %c0_31 = arith.constant 0 : index
    %66 = vector.load %arg7[%c0_30, %c0_31] : memref<128x128xbf16, #tpu.memory_space<vmem>>, vector<128x128xbf16>
    %cst_32 = arith.constant dense<0.000000e+00> : vector<16x128xf32>
    %67 = tpu.matmul %65, %66, %cst_32 {dimension_numbers = #tpu.dot_dimension_numbers<[1], [0], [0], [1], [0, 0, 1, 1], [], []>} : vector<16x128xbf16>, vector<128x128xbf16>, vector<16x128xf32> -> vector<16x128xf32>
    %c0_33 = arith.constant 0 : index
    %c0_34 = arith.constant 0 : index
    %68 = vector.load %arg8[%c0_33, %c0_34] : memref<1x128xf32, #tpu.memory_space<vmem>>, vector<1x128xf32>
    %69 = vector.broadcast %68 : vector<1x128xf32> to vector<16x128xf32>
    %70 = arith.addf %67, %69 : vector<16x128xf32>
    %71 = vector.extract_strided_slice %70 {offsets = [0, 0], sizes = [8, 128], strides = [1, 1]} : vector<16x128xf32> to vector<8x128xf32>
    %cst_35 = arith.constant dense<0.000000e+00> : vector<128xf32>
    %72 = vector.multi_reduction <add>, %71, %cst_35 [0] : vector<8x128xf32> to vector<128xf32>
    %73 = vector.shape_cast %72 : vector<128xf32> to vector<1x128xf32>
    %cst_36 = arith.constant 8.000000e+00 : f32
    %74 = vector.broadcast %cst_36 : f32 to vector<1x128xf32>
    %75 = arith.divf %73, %74 : vector<1x128xf32>
    %76 = vector.broadcast %75 : vector<1x128xf32> to vector<8x128xf32>
    %77 = arith.subf %71, %76 : vector<8x128xf32>
    %78 = arith.mulf %77, %77 : vector<8x128xf32>
    %cst_37 = arith.constant dense<0.000000e+00> : vector<128xf32>
    %79 = vector.multi_reduction <add>, %78, %cst_37 [0] : vector<8x128xf32> to vector<128xf32>
    %80 = vector.shape_cast %79 : vector<128xf32> to vector<1x128xf32>
    %cst_38 = arith.constant 8.000000e+00 : f32
    %81 = vector.broadcast %cst_38 : f32 to vector<1x128xf32>
    %82 = arith.divf %80, %81 : vector<1x128xf32>
    %cst_39 = arith.constant 9.99999974E-6 : f32
    %83 = vector.broadcast %cst_39 : f32 to vector<1x128xf32>
    %84 = arith.addf %82, %83 : vector<1x128xf32>
    %85 = math.rsqrt %84 : vector<1x128xf32>
    %86 = vector.broadcast %85 : vector<1x128xf32> to vector<8x128xf32>
    %87 = arith.mulf %77, %86 : vector<8x128xf32>
    %cst_40 = arith.constant 0.000000e+00 : f32
    %88 = vector.broadcast %cst_40 : f32 to vector<8x128xf32>
    %89 = arith.maximumf %87, %88 : vector<8x128xf32>
    %90 = vector.extract_strided_slice %70 {offsets = [8, 0], sizes = [8, 128], strides = [1, 1]} : vector<16x128xf32> to vector<8x128xf32>
    %cst_41 = arith.constant dense<0.000000e+00> : vector<128xf32>
    %91 = vector.multi_reduction <add>, %90, %cst_41 [0] : vector<8x128xf32> to vector<128xf32>
    %92 = vector.shape_cast %91 : vector<128xf32> to vector<1x128xf32>
    %cst_42 = arith.constant 8.000000e+00 : f32
    %93 = vector.broadcast %cst_42 : f32 to vector<1x128xf32>
    %94 = arith.divf %92, %93 : vector<1x128xf32>
    %95 = vector.broadcast %94 : vector<1x128xf32> to vector<8x128xf32>
    %96 = arith.subf %90, %95 : vector<8x128xf32>
    %97 = arith.mulf %96, %96 : vector<8x128xf32>
    %cst_43 = arith.constant dense<0.000000e+00> : vector<128xf32>
    %98 = vector.multi_reduction <add>, %97, %cst_43 [0] : vector<8x128xf32> to vector<128xf32>
    %99 = vector.shape_cast %98 : vector<128xf32> to vector<1x128xf32>
    %cst_44 = arith.constant 8.000000e+00 : f32
    %100 = vector.broadcast %cst_44 : f32 to vector<1x128xf32>
    %101 = arith.divf %99, %100 : vector<1x128xf32>
    %cst_45 = arith.constant 9.99999974E-6 : f32
    %102 = vector.broadcast %cst_45 : f32 to vector<1x128xf32>
    %103 = arith.addf %101, %102 : vector<1x128xf32>
    %104 = math.rsqrt %103 : vector<1x128xf32>
    %105 = vector.broadcast %104 : vector<1x128xf32> to vector<8x128xf32>
    %106 = arith.mulf %96, %105 : vector<8x128xf32>
    %cst_46 = arith.constant 0.000000e+00 : f32
    %107 = vector.broadcast %cst_46 : f32 to vector<8x128xf32>
    %108 = arith.maximumf %106, %107 : vector<8x128xf32>
    %109 = tpu.concatenate %89, %108 in 0 : vector<8x128xf32>, vector<8x128xf32> -> vector<16x128xf32>
    %110 = arith.truncf %109 : vector<16x128xf32> to vector<16x128xbf16>
    %c0_47 = arith.constant 0 : index
    %c0_48 = arith.constant 0 : index
    %111 = vector.load %arg9[%c0_47, %c0_48] : memref<128x128xbf16, #tpu.memory_space<vmem>>, vector<128x128xbf16>
    %cst_49 = arith.constant dense<0.000000e+00> : vector<16x128xf32>
    %112 = tpu.matmul %110, %111, %cst_49 {dimension_numbers = #tpu.dot_dimension_numbers<[1], [0], [0], [1], [0, 0, 1, 1], [], []>} : vector<16x128xbf16>, vector<128x128xbf16>, vector<16x128xf32> -> vector<16x128xf32>
    %c0_50 = arith.constant 0 : index
    %c0_51 = arith.constant 0 : index
    %113 = vector.load %arg10[%c0_50, %c0_51] : memref<1x128xf32, #tpu.memory_space<vmem>>, vector<1x128xf32>
    %114 = vector.broadcast %113 : vector<1x128xf32> to vector<16x128xf32>
    %115 = arith.addf %112, %114 : vector<16x128xf32>
    %116 = vector.extract_strided_slice %115 {offsets = [0, 0], sizes = [8, 128], strides = [1, 1]} : vector<16x128xf32> to vector<8x128xf32>
    %cst_52 = arith.constant dense<0.000000e+00> : vector<128xf32>
    %117 = vector.multi_reduction <add>, %116, %cst_52 [0] : vector<8x128xf32> to vector<128xf32>
    %118 = vector.shape_cast %117 : vector<128xf32> to vector<1x128xf32>
    %cst_53 = arith.constant 8.000000e+00 : f32
    %119 = vector.broadcast %cst_53 : f32 to vector<1x128xf32>
    %120 = arith.divf %118, %119 : vector<1x128xf32>
    %121 = vector.broadcast %120 : vector<1x128xf32> to vector<8x128xf32>
    %122 = arith.subf %116, %121 : vector<8x128xf32>
    %123 = arith.mulf %122, %122 : vector<8x128xf32>
    %cst_54 = arith.constant dense<0.000000e+00> : vector<128xf32>
    %124 = vector.multi_reduction <add>, %123, %cst_54 [0] : vector<8x128xf32> to vector<128xf32>
    %125 = vector.shape_cast %124 : vector<128xf32> to vector<1x128xf32>
    %cst_55 = arith.constant 8.000000e+00 : f32
    %126 = vector.broadcast %cst_55 : f32 to vector<1x128xf32>
    %127 = arith.divf %125, %126 : vector<1x128xf32>
    %cst_56 = arith.constant 9.99999974E-6 : f32
    %128 = vector.broadcast %cst_56 : f32 to vector<1x128xf32>
    %129 = arith.addf %127, %128 : vector<1x128xf32>
    %130 = math.rsqrt %129 : vector<1x128xf32>
    %131 = vector.broadcast %130 : vector<1x128xf32> to vector<8x128xf32>
    %132 = arith.mulf %122, %131 : vector<8x128xf32>
    %cst_57 = arith.constant 0.000000e+00 : f32
    %133 = vector.broadcast %cst_57 : f32 to vector<8x128xf32>
    %134 = arith.maximumf %132, %133 : vector<8x128xf32>
    %135 = vector.extract_strided_slice %115 {offsets = [8, 0], sizes = [8, 128], strides = [1, 1]} : vector<16x128xf32> to vector<8x128xf32>
    %cst_58 = arith.constant dense<0.000000e+00> : vector<128xf32>
    %136 = vector.multi_reduction <add>, %135, %cst_58 [0] : vector<8x128xf32> to vector<128xf32>
    %137 = vector.shape_cast %136 : vector<128xf32> to vector<1x128xf32>
    %cst_59 = arith.constant 8.000000e+00 : f32
    %138 = vector.broadcast %cst_59 : f32 to vector<1x128xf32>
    %139 = arith.divf %137, %138 : vector<1x128xf32>
    %140 = vector.broadcast %139 : vector<1x128xf32> to vector<8x128xf32>
    %141 = arith.subf %135, %140 : vector<8x128xf32>
    %142 = arith.mulf %141, %141 : vector<8x128xf32>
    %cst_60 = arith.constant dense<0.000000e+00> : vector<128xf32>
    %143 = vector.multi_reduction <add>, %142, %cst_60 [0] : vector<8x128xf32> to vector<128xf32>
    %144 = vector.shape_cast %143 : vector<128xf32> to vector<1x128xf32>
    %cst_61 = arith.constant 8.000000e+00 : f32
    %145 = vector.broadcast %cst_61 : f32 to vector<1x128xf32>
    %146 = arith.divf %144, %145 : vector<1x128xf32>
    %cst_62 = arith.constant 9.99999974E-6 : f32
    %147 = vector.broadcast %cst_62 : f32 to vector<1x128xf32>
    %148 = arith.addf %146, %147 : vector<1x128xf32>
    %149 = math.rsqrt %148 : vector<1x128xf32>
    %150 = vector.broadcast %149 : vector<1x128xf32> to vector<8x128xf32>
    %151 = arith.mulf %141, %150 : vector<8x128xf32>
    %cst_63 = arith.constant 0.000000e+00 : f32
    %152 = vector.broadcast %cst_63 : f32 to vector<8x128xf32>
    %153 = arith.maximumf %151, %152 : vector<8x128xf32>
    %154 = tpu.concatenate %134, %153 in 0 : vector<8x128xf32>, vector<8x128xf32> -> vector<16x128xf32>
    %155 = arith.truncf %154 : vector<16x128xf32> to vector<16x128xbf16>
    %c0_64 = arith.constant 0 : index
    %c0_65 = arith.constant 0 : index
    %156 = vector.load %arg11[%c0_64, %c0_65] : memref<128x128xbf16, #tpu.memory_space<vmem>>, vector<128x128xbf16>
    %cst_66 = arith.constant dense<0.000000e+00> : vector<16x128xf32>
    %157 = tpu.matmul %155, %156, %cst_66 {dimension_numbers = #tpu.dot_dimension_numbers<[1], [0], [0], [1], [0, 0, 1, 1], [], []>} : vector<16x128xbf16>, vector<128x128xbf16>, vector<16x128xf32> -> vector<16x128xf32>
    %c0_67 = arith.constant 0 : index
    %c0_68 = arith.constant 0 : index
    %158 = vector.load %arg12[%c0_67, %c0_68] : memref<1x128xf32, #tpu.memory_space<vmem>>, vector<1x128xf32>
    %159 = vector.broadcast %158 : vector<1x128xf32> to vector<16x128xf32>
    %160 = arith.addf %157, %159 : vector<16x128xf32>
    %161 = vector.extract_strided_slice %160 {offsets = [0, 0], sizes = [8, 128], strides = [1, 1]} : vector<16x128xf32> to vector<8x128xf32>
    %c0_69 = arith.constant 0 : index
    %c0_70 = arith.constant 0 : index
    %162 = vector.load %arg14[%c0_69, %c0_70] : memref<8x128xf32, #tpu.memory_space<vmem>>, vector<8x128xf32>
    tpu.vector_store %arg14[%c0_69, %c0_70], %161 {strides = array<i32>} : memref<8x128xf32, #tpu.memory_space<vmem>>, vector<8x128xf32>,
    %163 = vector.extract_strided_slice %160 {offsets = [8, 0], sizes = [8, 128], strides = [1, 1]} : vector<16x128xf32> to vector<8x128xf32>
    %cst_71 = arith.constant 1.000000e+00 : f32
    %164 = vector.broadcast %cst_71 : f32 to vector<8x128xf32>
    %165 = arith.addf %164, %56 : vector<8x128xf32>
    %166 = arith.mulf %55, %55 : vector<8x128xf32>
    %167 = arith.subf %165, %166 : vector<8x128xf32>
    %168 = math.exp %56 : vector<8x128xf32>
    %169 = arith.subf %167, %168 : vector<8x128xf32>
    %170 = vector.shape_cast %169 : vector<8x128xf32> to vector<1x8x128xf32>
    %cst_72 = arith.constant dense<0.000000e+00> : vector<1xf32>
    %171 = vector.multi_reduction <add>, %170, %cst_72 [1, 2] : vector<1x8x128xf32> to vector<1xf32>
    %172 = vector.shape_cast %171 : vector<1xf32> to vector<1x1x1xf32>
    %173 = vector.extract %172[0, 0, 0] : f32 from vector<1x1x1xf32>
    %cst_73 = arith.constant -5.000000e-01 : f32
    %174 = arith.mulf %cst_73, %173 : f32
    %175 = arith.subf %163, %0 : vector<8x128xf32>
    %176 = arith.mulf %175, %175 : vector<8x128xf32>
    %177 = vector.shape_cast %176 : vector<8x128xf32> to vector<1x8x128xf32>
    %cst_74 = arith.constant dense<0.000000e+00> : vector<1xf32>
    %178 = vector.multi_reduction <add>, %177, %cst_74 [1, 2] : vector<1x8x128xf32> to vector<1xf32>
    %179 = vector.shape_cast %178 : vector<1xf32> to vector<1x1x1xf32>
    %180 = vector.extract %179[0, 0, 0] : f32 from vector<1x1x1xf32>
    %181 = arith.addf %174, %180 : f32
    %c0_75 = arith.constant 0 : index
    %c0_76 = arith.constant 0 : index
    %182 = memref.load %arg15[%c0_75, %c0_76] : memref<1x1xf32, #tpu.memory_space<smem>>
    memref.store %181, %arg15[%c0_75, %c0_76] : memref<1x1xf32, #tpu.memory_space<smem>>
    return
  }
}

</mosaic_0001>

<bundles_post_ra>
// kernel: vae_forward.3
= control target key start
LH: loop header
LB: loop body
LE: loop exit
PB: predicated region body
PF: predicated region fallthrough
CT: control target
= control target key end

     0   :  { %21 = vsyncpa [#allocation3], 0  ;;  %s1599_s0 = inlined_call_operand.vmem [shape: f32[8,128], index: 0, kind: input, shape index: {}]   ;;  %s1600_s1 = inlined_call_operand.vmem [shape: bf16[128,128], index: 1, kind: input, shape index: {}]   ;;  %s1601_s2 = inlined_call_operand.vmem [shape: f32[1,128], index: 2, kind: input, shape index: {}]   ;;  %s1602_s3 = inlined_call_operand.vmem [shape: bf16[128,128], index: 3, kind: input, shape index: {}]   ;;  %s1603_s4 = inlined_call_operand.vmem [shape: f32[1,128], index: 4, kind: input, shape index: {}]   ;;  %s1604_s5 = inlined_call_operand.vmem [shape: bf16[128,256], index: 5, kind: input, shape index: {}]   ;;  %s1605_s6 = inlined_call_operand.vmem [shape: f32[1,256], index: 6, kind: input, shape index: {}]   ;;  %s1606_s7 = inlined_call_operand.vmem [shape: bf16[128,128], index: 7, kind: input, shape index: {}]   ;;  %s1607_s8 = inlined_call_operand.vmem [shape: f32[1,128], index: 8, kind: input, shape index: {}]   ;;  %s1608_s9 = inlined_call_operand.hbm [shape: bf16[128,128], index: 9, kind: input, shape index: {}]   ;;  %s1609_s10 = inlined_call_operand.vmem [shape: f32[1,128], index: 10, kind: input, shape index: {}]   ;;  %s1610_s11 = inlined_call_operand.hbm [shape: bf16[128,128], index: 11, kind: input, shape index: {}]   ;;  %s1611_s12 = inlined_call_operand.vmem [shape: f32[1,128], index: 12, kind: input, shape index: {}]   ;;  %s1612_s13 = inlined_call_operand.vmem [shape: f32[16,128], index: 13, kind: input, shape index: {}]   ;;  %s1613_s14 = inlined_call_operand.hbm [shape: f32[8,128], index: 14, kind: output, shape index: {0}]   ;;  %s1614_s15 = inlined_call_operand.hbm [shape: f32[1,1], index: 15, kind: output, shape index: {1}]  }
   0x1   :  { %22 = vsyncpa [#allocation7], 0 }
   0x2   :  { %23 = vsyncpa [#allocation4], 0 }
   0x3   :  { %24 = vsyncpa [#allocation5], 0  ;;  %s47_s20 = sshll.u32 %s1608_s9, 4  ;;  %s1286_s21 = smov [#allocation2]   ;;  %s48_s20 = int_to_ptr.hbm [resolvable:$true] %s47_s20 }
   0x4   :  { %s49_s22 = sshll.u32 %s1286_s21, 4  ;;  %s62_s25 = sshll.u32 %s1610_s11, 4  ;;  %s50_s22 = int_to_ptr.vmem [resolvable:$true] %s49_s22  ;;  %s63_s25 = int_to_ptr.hbm [resolvable:$true] %s62_s25 }
   0x5   :  { %s1287_s26 = smov 64   ;;  %s1288_s27 = smov 4  }
   0x6   :  { %55 = dma.hbm_to_vmem [thread:$0]  %s48_s20, 1024, %s50_s22, [#allocation3], %s1287_s26, %s1287_s26, %s1288_s27  }
   0x7   :  { %s1289_s28 = smov [#allocation6]  }
   0x8   :  { %s64_s29 = sshll.u32 %s1289_s28, 4  ;;  %s65_s29 = int_to_ptr.vmem [resolvable:$true] %s64_s29 }
   0x9   :  { %70 = dma.hbm_to_vmem [thread:$0]  %s63_s25, 1024, %s65_s29, [#allocation7], %s1287_s26, %s1287_s26, %s1288_s27  }
   0xa   :  { %1278 = dma.done.wait [#allocation3], 1024  }
   0xb   :  { %1279 = vsyncadd [#allocation3], 4294966272 }
   0xc   :  { %1280 = dma.done.wait [#allocation7], 1024  }
   0xd   :  { %1281 = vsyncadd [#allocation7], 4294966272  ;;  %v1111_v0 = vld [vmem:[%s1600_s1 + $0x38] sm:$0xff]  ;;  %v1110_v1 = vld [vmem:[%s1600_s1 + $0x30] sm:$0xff]  ;;  %v1290_v13 = vmov 8.0   ;;  %s854_s17 = sshll.u32 %s1613_s14, 4  ;;  %s855_s17 = int_to_ptr.hbm [resolvable:$true] %s854_s17 }
   0xe   :  { %153 = vmatpush.bf16.msra.mxu0 %v1111_v0  ;;  %v1109_v2 = vld [vmem:[%s1600_s1 + $0x28] sm:$0xff]  ;;  %v1108_v3 = vld [vmem:[%s1600_s1 + $0x20] sm:$0xff]  ;;  %v1107_v4 = vld [vmem:[%s1600_s1 + $0x18] sm:$0xff]  ;;  %1176 = vrcp.f32 %v1290_v13  ;;  %s863_s18 = sshll.u32 %s1614_s15, 4  ;;  %s1292_s14 = smov [#allocation9]   ;;  %s864_s18 = int_to_ptr.hbm [resolvable:$true] %s863_s18 }
   0xf   :  { %v1106_v5 = vld [vmem:[%s1600_s1 + $0x10] sm:$0xff]  ;;  %v1105_v6 = vld [vmem:[%s1600_s1 + $0x8] sm:$0xff]  ;;  %v1104_v7 = vld [vmem:[%s1600_s1] sm:$0xff] }
  0x10   :  { %v1406_v8 = vld [vmem:[%s1599_s0] sm:$0xff]  ;;  %v1119_v10 = vld [vmem:[%s1602_s3 + $0x38] sm:$0xff]  ;;  %v1118_v11 = vld [vmem:[%s1602_s3 + $0x30] sm:$0xff] }
  0x11   :  { %v84_v9 = vpack.c.bf16 %v1406_v8, %v1406_v8  ;;  %271 = vmatpush.bf16.msra.mxu1 %v1119_v10  ;;  %v1117_v12 = vld [vmem:[%s1602_s3 + $0x28] sm:$0xff]  ;;  %v1116_v14 = vld [vmem:[%s1602_s3 + $0x20] sm:$0xff]  ;;  %v1115_v16 = vld [vmem:[%s1602_s3 + $0x18] sm:$0xff] }
  0x12   :  { %154 = vmatpush.bf16.msra.mxu0 %v1110_v1  ;;  %v1171_v18 = vld [vmem:[%s1601_s2] ss:$0 sm:$0xff]  ;;  %v1114_v19 = vld [vmem:[%s1602_s3 + $0x10] sm:$0xff]  ;;  %v1113_v23 = vld [vmem:[%s1602_s3 + $0x8] sm:$0xff] }
  0x13   :  { %v1112_v27 = vld [vmem:[%s1602_s3] sm:$0xff]  ;;  %v1002_v56 = vld [vmem:[%s1604_s5 + $0x70] sm:$0xf]  ;;  %v1135_v57 = vld [vmem:[%s1604_s5 + $0x74] sm:$0xf0] }
  0x14   :  { %v1177_v15 = vpop.eup %1176  ;;  %v1134_v58 = vld [vmem:[%s1604_s5 + $0x74] sm:$0xf]  ;;  %v1003_v59 = vor.u32 %v1135_v57, %v1002_v56  ;;  %v1004_v60 = vld [vmem:[%s1604_s5 + $0x78] sm:$0xf0]  ;;  %v994_v61 = vld [vmem:[%s1604_s5 + $0x60] sm:$0xf] }
  0x15   :  { %272 = vmatpush.bf16.msra.mxu1 %v1118_v11  ;;  %v173_v17 = vmul.f32 8.0, %v1177_v15  ;;  %vm177_vm0 = vweird.f32 %v1177_v15  ;;  %v1133_v62 = vld [vmem:[%s1604_s5 + $0x64] sm:$0xf0]  ;;  %v1007_v63 = vor.u32 %v1134_v58, %v1004_v60  ;;  %v1132_v0 = vld [vmem:[%s1604_s5 + $0x64] sm:$0xf]  ;;  %v1143_v60 = vld [vmem:[%s1606_s7 + $0x38] sm:$0xff] }
  0x16   :  { %155 = vmatpush.bf16.msra.mxu0 %v1109_v2  ;;  %v996_v1 = vld [vmem:[%s1604_s5 + $0x68] sm:$0xf0]  ;;  %416 = vmatpush.bf16.msra.mxu2 %v1003_v59  ;;  %v995_v2 = vor.u32 %v1133_v62, %v994_v61  ;;  %v978_v11 = vld [vmem:[%s1604_s5 + $0x40] sm:$0xf]  ;;  %v1128_v13 = vld [vmem:[%s1604_s5 + $0x44] sm:$0xf] }
  0x17   :  { %v174_v21 = vsub.f32 1.0, %v173_v17  ;;  %429 = vmatpush.bf16.msra.mxu3 %v1007_v63  ;;  %v970_v17 = vld [vmem:[%s1604_s5 + $0x30] sm:$0xf] }
  0x18   :  { %v1142_v62 = vld [vmem:[%s1606_s7 + $0x30] sm:$0xff] }
  0x19   :  { %273 = vmatpush.bf16.msra.mxu1 %v1117_v12  ;;  %v175_v25 = vmul.f32 %v1177_v15, %v174_v21  ;;  %v1129_v12 = vld [vmem:[%s1604_s5 + $0x44] sm:$0xf0] }
  0x1a   :  { %156 = vmatpush.bf16.msra.mxu0 %v1108_v3  ;;  %v999_v3 = vor.u32 %v1132_v0, %v996_v1  ;;  %417 = vmatpush.bf16.msra.mxu2 %v995_v2  ;;  %v1141_v1 = vld [vmem:[%s1606_s7 + $0x28] sm:$0xff] }
  0x1b   :  { %v176_v30 = vadd.f32 %v1177_v15, %v175_v25  ;;  %v1124_v25 = vld [vmem:[%s1604_s5 + $0x24] sm:$0xf] }
  0x1c   :  { %430 = vmatpush.bf16.msra.mxu3 %v999_v3 }
  0x1d   :  { %274 = vmatpush.bf16.msra.mxu1 %v1116_v14  ;;  %v1437_v33 = vsel %vm177_vm0, %v1177_v15, %v176_v30  ;;  %v980_v14 = vld [vmem:[%s1604_s5 + $0x48] sm:$0xf0]  ;;  %v979_v15 = vor.u32 %v1129_v12, %v978_v11  ;;  %v954_v30 = vld [vmem:[%s1604_s5 + $0x10] sm:$0xf] }
  0x1e   :  { %157 = vmatpush.bf16.msra.mxu0 %v1107_v4  ;;  %v986_v4 = vld [vmem:[%s1604_s5 + $0x50] sm:$0xf] }
  0x21   :  { %275 = vmatpush.bf16.msra.mxu1 %v1115_v16  ;;  %v983_v16 = vor.u32 %v1128_v13, %v980_v14  ;;  %v1140_v13 = vld [vmem:[%s1606_s7 + $0x20] sm:$0xff]  ;;  %v1139_v14 = vld [vmem:[%s1606_s7 + $0x18] sm:$0xff] }
  0x22   :  { %158 = vmatpush.bf16.msra.mxu0 %v1106_v5  ;;  %v1131_v5 = vld [vmem:[%s1604_s5 + $0x54] sm:$0xf0] }
  0x25   :  { %276 = vmatpush.bf16.msra.mxu1 %v1114_v19  ;;  %v1126_v19 = vld [vmem:[%s1604_s5 + $0x34] sm:$0xf] }
  0x26   :  { %159 = vmatpush.bf16.msra.mxu0 %v1105_v6  ;;  %v1130_v6 = vld [vmem:[%s1604_s5 + $0x54] sm:$0xf] }
  0x29   :  { %277 = vmatpush.bf16.msra.mxu1 %v1113_v23  ;;  %v962_v23 = vld [vmem:[%s1604_s5 + $0x20] sm:$0xf] }
  0x2a   :  { %160 = vmatpush.bf16.msra.mxu0 %v1104_v7  ;;  %v988_v7 = vld [vmem:[%s1604_s5 + $0x58] sm:$0xf0] }
  0x2b   :  { %v991_v10 = vor.u32 %v1130_v6, %v988_v7 }
  0x2d   :  { %161 = vmatmul.bf16.vlgmr.msra.gmra.mxu0 %v84_v9  ;;  %278 = vmatpush.bf16.msra.mxu1 %v1112_v27  ;;  %v987_v9 = vor.u32 %v1131_v5, %v986_v4  ;;  %v1172_v27 = vld [vmem:[%s1603_s4] ss:$0 sm:$0xff] }
  0x2e   :  { %431 = vmatpush.bf16.msra.mxu3 %v991_v10  ;;  %520 = vmatpush.bf16.msrb.mxu0 %v1143_v60 }
  0x2f   :  { %418 = vmatpush.bf16.msra.mxu2 %v987_v9 }
  0x32   :  { %432 = vmatpush.bf16.msra.mxu3 %v983_v16  ;;  %521 = vmatpush.bf16.msrb.mxu0 %v1142_v62  ;;  %v1137_v16 = vld [vmem:[%s1606_s7 + $0x8] sm:$0xff] }
  0x33   :  { %419 = vmatpush.bf16.msra.mxu2 %v979_v15  ;;  %v1138_v15 = vld [vmem:[%s1606_s7 + $0x10] sm:$0xff]  ;;  %v1149_v62 = vld [vmem:[#allocation2 + $0x28] sm:$0xff] }
  0x36   :  { %522 = vmatpush.bf16.msrb.mxu0 %v1141_v1 }
  0x3a   :  { %523 = vmatpush.bf16.msrb.mxu0 %v1140_v13 }
  0x3e   :  { %524 = vmatpush.bf16.msrb.mxu0 %v1139_v14  ;;  %v1146_v14 = vld [vmem:[#allocation2 + $0x10] sm:$0xff] }
  0x42   :  { %525 = vmatpush.bf16.msrb.mxu0 %v1138_v15 }
  0x46   :  { %526 = vmatpush.bf16.msrb.mxu0 %v1137_v16 }
  0xaa   :  { %v162_v20 = vpop.f32.mrf.mxu0 }
  0xab   :  { %v163_v22 = vadd.f32 %v1171_v18, %v162_v20  ;;  %v1127_v18 = vld [vmem:[%s1604_s5 + $0x34] sm:$0xf0]  ;;  %v972_v20 = vld [vmem:[%s1604_s5 + $0x38] sm:$0xf0] }
  0xac   :  { %v971_v21 = vor.u32 %v1127_v18, %v970_v17  ;;  %v1136_v17 = vld [vmem:[%s1606_s7] sm:$0xff] }
  0xad   :  { %v166_v24 = vrot.slane %v163_v22, 4  ;;  %527 = vmatpush.bf16.msrb.mxu0 %v1136_v17  ;;  %v330_v18 = vld [vmem:[%s1605_s6] sm:$0x3] }
  0xae   :  { %420 = vmatpush.bf16.msra.mxu2 %v971_v21 }
  0xaf   :  { %v167_v26 = vadd.f32 %v166_v24, %v163_v22  ;;  %v1125_v24 = vld [vmem:[%s1604_s5 + $0x24] sm:$0xf0] }
  0xb1   :  { %v168_v28 = vrot.slane %v167_v26, 2 }
  0xb2   :  { %v164_v29 = vpop.f32.mrf.mxu0 }
  0xb3   :  { %v169_v31 = vadd.f32 %v168_v28, %v167_v26  ;;  %v964_v26 = vld [vmem:[%s1604_s5 + $0x28] sm:$0xf0]  ;;  %v963_v28 = vor.u32 %v1125_v24, %v962_v23 }
  0xb4   :  { %v967_v29 = vor.u32 %v1124_v25, %v964_v26 }
  0xb5   :  { %v170_v32 = vrot.slane %v169_v31, 1  ;;  %421 = vmatpush.bf16.msra.mxu2 %v963_v28 }
  0xb7   :  { %v171_v34 = vadd.f32 %v170_v32, %v169_v31  ;;  %v1123_v31 = vld [vmem:[%s1604_s5 + $0x14] sm:$0xf0] }
  0xb9   :  { %v179_v35 = vmul.f32 %v1437_v33, %v171_v34  ;;  %v1122_v34 = vld [vmem:[%s1604_s5 + $0x14] sm:$0xf] }
  0xbb   :  { %v180_v36 = vsub.f32 %v163_v22, %v179_v35  ;;  %v975_v22 = vor.u32 %v1126_v19, %v972_v20  ;;  %v956_v35 = vld [vmem:[%s1604_s5 + $0x18] sm:$0xf0]  ;;  %v333_v19 = vperm.slane %v330_v18, 1  ;;  %v332_v20 = vperm.slane %v330_v18, 0 }
  0xbd   :  { %v181_v37 = vmul.f32 %v180_v36, %v180_v36  ;;  %433 = vmatpush.bf16.msra.mxu3 %v975_v22 }
  0xbf   :  { %v182_v38 = vrot.slane %v181_v37, 4 }
  0xc1   :  { %v183_v39 = vadd.f32 %v182_v38, %v181_v37  ;;  %v955_v37 = vor.u32 %v1123_v31, %v954_v30  ;;  %434 = vmatpush.bf16.msra.mxu3 %v967_v29 }
  0xc3   :  { %v184_v40 = vrot.slane %v183_v39, 2  ;;  %422 = vmatpush.bf16.msra.mxu2 %v955_v37 }
  0xc5   :  { %v185_v41 = vadd.f32 %v184_v40, %v183_v39  ;;  %v959_v39 = vor.u32 %v1122_v34, %v956_v35  ;;  %v946_v40 = vld [vmem:[%s1604_s5] sm:$0xf] }
  0xc6   :  { %v445_v35 = vld [vmem:[%s1612_s13] sm:$0xff] }
  0xc7   :  { %v186_v42 = vrot.slane %v185_v41, 1  ;;  %435 = vmatpush.bf16.msra.mxu3 %v959_v39 }
  0xc9   :  { %v187_v43 = vadd.f32 %v186_v42, %v185_v41  ;;  %v1121_v41 = vld [vmem:[%s1604_s5 + $0x4] sm:$0xf0]  ;;  %v1120_v42 = vld [vmem:[%s1604_s5 + $0x4] sm:$0xf] }
  0xcb   :  { %v188_v44 = vmul.f32 %v187_v43, %v1437_v33  ;;  %v948_v43 = vld [vmem:[%s1604_s5 + $0x8] sm:$0xf0]  ;;  %s1291_s5 = smov [#allocation8]  }
  0xcc   :  { %s852_s9 = sshll.u32 %s1291_s5, 4  ;;  %s853_s9 = int_to_ptr.vmem [resolvable:$true] %s852_s9 }
  0xcd   :  { %v189_v45 = vadd.f32 1e-05, %v188_v44 }
  0xcf   :  { %1178 = vrsqrt.f32 %v189_v45  ;;  %vm196_vm2 = vweird.f32 %v189_v45 }
  0xd5   :  { %v1179_v46 = vpop.eup %1178 }
  0xd6   :  { %v191_v47 = vmul.f32 %v1179_v46, %v189_v45  ;;  %vm197_vm1 = vweird.f32 %v1179_v46  ;;  %v947_v45 = vor.u32 %v1121_v41, %v946_v40 }
  0xd7   :  { %vm198_vm3 = vmor %vm196_vm2, %vm197_vm1 }
  0xd8   :  { %v192_v48 = vmul.f32 %v1179_v46, %v191_v47  ;;  %v951_v47 = vor.u32 %v1120_v42, %v948_v43  ;;  %423 = vmatpush.bf16.msra.mxu2 %v947_v45 }
  0xda   :  { %v193_v49 = vmul.f32 0.5, %v192_v48  ;;  %436 = vmatpush.bf16.msra.mxu3 %v951_v47 }
  0xdc   :  { %v194_v50 = vsub.f32 1.5, %v193_v49 }
  0xde   :  { %v195_v51 = vmul.f32 %v1179_v46, %v194_v50 }
  0xe0   :  { %v199_v52 = vsel %vm198_vm3, %v1179_v46, %v195_v51 }
  0xe1   :  { %v200_v53 = vmul.f32 %v199_v52, %v180_v36 }
  0xe3   :  { %v201_v54 = vmax.f32 %v200_v53, 0.0 }
  0xe5   :  { %v202_v55 = vpack.c.bf16 %v201_v54, %v201_v54 }
  0xe7   :  { %279 = vmatmul.bf16.vlgmr.msra.gmra.mxu1 %v202_v55 }
 0x164   :  { %v280_v32 = vpop.f32.mrf.mxu1 }
 0x165   :  { %v281_v36 = vadd.f32 %v1172_v27, %v280_v32 }
 0x167   :  { %v284_v38 = vrot.slane %v281_v36, 4 }
 0x169   :  { %v285_v44 = vadd.f32 %v284_v38, %v281_v36 }
 0x16b   :  { %v286_v46 = vrot.slane %v285_v44, 2 }
 0x16c   :  { %v282_v48 = vpop.f32.mrf.mxu1 }
 0x16d   :  { %v287_v49 = vadd.f32 %v286_v46, %v285_v44 }
 0x16f   :  { %v288_v50 = vrot.slane %v287_v49, 1 }
 0x171   :  { %v289_v51 = vadd.f32 %v288_v50, %v287_v49 }
 0x173   :  { %v290_v52 = vmul.f32 %v289_v51, %v1437_v33  ;;  %v1173_v51 = vld [vmem:[%s1607_s8] ss:$0 sm:$0xff] }
 0x175   :  { %v291_v53 = vsub.f32 %v281_v36, %v290_v52  ;;  %v446_v36 = vld [vmem:[%s1612_s13 + $0x8] sm:$0xff] }
 0x177   :  { %v292_v54 = vmul.f32 %v291_v53, %v291_v53 }
 0x179   :  { %v293_v55 = vrot.slane %v292_v54, 4 }
 0x17b   :  { %v294_v56 = vadd.f32 %v293_v55, %v292_v54  ;;  %v1151_v55 = vld [vmem:[#allocation2 + $0x38] sm:$0xff] }
 0x17c   :  { %661 = vmatpush.bf16.msrb.mxu1 %v1151_v55  ;;  %v1174_v55 = vld [vmem:[%s1609_s10] ss:$0 sm:$0xff] }
 0x17d   :  { %v295_v57 = vrot.slane %v294_v56, 2 }
 0x17f   :  { %v296_v58 = vadd.f32 %v295_v57, %v294_v56 }
 0x181   :  { %v297_v59 = vrot.slane %v296_v58, 1 }
 0x183   :  { %v298_v61 = vadd.f32 %v297_v59, %v296_v58  ;;  %v1150_v59 = vld [vmem:[#allocation2 + $0x30] sm:$0xff] }
 0x184   :  { %662 = vmatpush.bf16.msrb.mxu1 %v1150_v59  ;;  %v1159_v59 = vld [vmem:[#allocation6 + $0x38] sm:$0xff] }
 0x185   :  { %v299_v63 = vmul.f32 %v298_v61, %v1437_v33  ;;  %802 = vmatpush.bf16.msrb.mxu2 %v1159_v59 }
 0x187   :  { %v300_v0 = vadd.f32 1e-05, %v299_v63 }
 0x188   :  { %663 = vmatpush.bf16.msrb.mxu1 %v1149_v62 }
 0x189   :  { %1180 = vrsqrt.f32 %v300_v0  ;;  %vm307_vm5 = vweird.f32 %v300_v0 }
 0x18f   :  { %v1181_v2 = vpop.eup %1180 }
 0x190   :  { %v302_v3 = vmul.f32 %v1181_v2, %v300_v0  ;;  %vm308_vm4 = vweird.f32 %v1181_v2 }
 0x191   :  { %vm309_vm6 = vmor %vm307_vm5, %vm308_vm4 }
 0x192   :  { %v303_v4 = vmul.f32 %v1181_v2, %v302_v3 }
 0x194   :  { %v304_v5 = vmul.f32 0.5, %v303_v4 }
 0x196   :  { %v305_v6 = vsub.f32 1.5, %v304_v5  ;;  %v1148_v5 = vld [vmem:[#allocation2 + $0x20] sm:$0xff] }
 0x197   :  { %664 = vmatpush.bf16.msrb.mxu1 %v1148_v5 }
 0x198   :  { %v306_v7 = vmul.f32 %v1181_v2, %v305_v6 }
 0x19a   :  { %v310_v9 = vsel %vm309_vm6, %v1181_v2, %v306_v7 }
 0x19b   :  { %v311_v10 = vmul.f32 %v310_v9, %v291_v53  ;;  %v1147_v9 = vld [vmem:[#allocation2 + $0x18] sm:$0xff] }
 0x19c   :  { %665 = vmatpush.bf16.msrb.mxu1 %v1147_v9 }
 0x19d   :  { %v312_v11 = vmax.f32 %v311_v10, 0.0 }
 0x19f   :  { %v313_v12 = vpack.c.bf16 %v312_v11, %v312_v11 }
 0x1a0   :  { %666 = vmatpush.bf16.msrb.mxu1 %v1146_v14 }
 0x1a1   :  { %424 = vmatmul.bf16.vlgmr.msra.gmra.mxu2 %v313_v12  ;;  %437 = vmatmul.bf16.vlgmr.msra.gmra.mxu3 %v313_v12 }
 0x224   :  { %v425_v21 = vpop.f32.mrf.mxu2  ;;  %v438_v22 = vpop.f32.mrf.mxu3 }
 0x225   :  { %v439_v23 = vadd.f32 %v438_v22, %v333_v19  ;;  %v426_v24 = vadd.f32 %v425_v21, %v332_v20  ;;  %v1145_v19 = vld [vmem:[#allocation2 + $0x8] sm:$0xff] }
 0x226   :  { %667 = vmatpush.bf16.msrb.mxu1 %v1145_v19 }
 0x227   :  { %v442_v25 = vmul.f32 0.5, %v439_v23  ;;  %v820_v26 = vmul.f32 1.442695, %v439_v23  ;;  %v817_v28 = vadd.f32 1.0, %v439_v23  ;;  %v818_v29 = vmul.f32 %v426_v24, %v426_v24 }
 0x229   :  { %v443_v27 = vmul.f32 1.442695, %v442_v25  ;;  %1182 = vpow2.f32 %v820_v26  ;;  %v819_v32 = vsub.f32 %v817_v28, %v818_v29 }
 0x22b   :  { %1184 = vpow2.f32 %v443_v27 }
 0x22c   :  { %v427_v30 = vpop.f32.mrf.mxu2  ;;  %v440_v31 = vpop.f32.mrf.mxu3 }
 0x22f   :  { %v1183_v34 = vpop.eup %1182 }
 0x230   :  { %v822_v37 = vsub.f32 %v819_v32, %v1183_v34 }
 0x231   :  { %v1185_v38 = vpop.eup %1184 }
 0x232   :  { %823 = vadd.xlane.f32.xlu0 %v822_v37  ;;  %v447_v39 = vmul.f32 %v1185_v38, %v445_v35  ;;  %v448_v40 = vmul.f32 %v1185_v38, %v446_v36 }
 0x234   :  { %v449_v41 = vadd.f32 %v447_v39, %v426_v24  ;;  %v450_v42 = vadd.f32 %v448_v40, %v426_v24  ;;  %v1144_v24 = vld [vmem:[#allocation2] sm:$0xff] }
 0x235   :  { %668 = vmatpush.bf16.msrb.mxu1 %v1144_v24 }
 0x236   :  { %v451_v43 = vpack.c.bf16 %v450_v42, %v449_v41 }
 0x238   :  { %528 = vmatmul.bf16.vlgmr.msrb.gmra.mxu0 %v451_v43 }
 0x2a5   :  { %v824_v44 = vpop.xlane.xlu0 %823 }
 0x2a6   :  { %v825_v45 = vrot.slane %v824_v44, 4 }
 0x2a8   :  { %v826_v46 = vadd.f32 %v825_v45, %v824_v44 }
 0x2aa   :  { %v827_v47 = vrot.slane %v826_v46, 2 }
 0x2ac   :  { %v828_v48 = vadd.f32 %v827_v47, %v826_v46 }
 0x2ae   :  { %v829_v49 = vrot.slane %v828_v48, 1 }
 0x2b0   :  { %v830_v50 = vadd.f32 %v829_v49, %v828_v48 }
 0x2b2   :  { %1160 = vpush %v830_v50 }
 0x2b5   :  { %v529_v52 = vpop.f32.mrf.mxu0 }
 0x2b6   :  { %v530_v53 = vadd.f32 %v1173_v51, %v529_v52 }
 0x2b8   :  { %v534_v54 = vrot.slane %v530_v53, 4 }
 0x2ba   :  { %v535_v56 = vadd.f32 %v534_v54, %v530_v53 }
 0x2bc   :  { %v536_v57 = vrot.slane %v535_v56, 2 }
 0x2bd   :  { %v531_v58 = vpop.f32.mrf.mxu0 }
 0x2be   :  { %v537_v60 = vadd.f32 %v536_v57, %v535_v56  ;;  %v532_v61 = vadd.f32 %v1173_v51, %v531_v58 }
 0x2c0   :  { %v538_v63 = vrot.slane %v537_v60, 1  ;;  %v563_v0 = vrot.slane %v532_v61, 4 }
 0x2c2   :  { %v539_v1 = vadd.f32 %v538_v63, %v537_v60  ;;  %v564_v2 = vadd.f32 %v563_v0, %v532_v61  ;;  %v1158_v63 = vld [vmem:[#allocation6 + $0x30] sm:$0xff] }
 0x2c3   :  { %803 = vmatpush.bf16.msrb.mxu2 %v1158_v63 }
 0x2c4   :  { %v540_v3 = vmul.f32 %v539_v1, %v1437_v33  ;;  %v565_v4 = vrot.slane %v564_v2, 2 }
 0x2c6   :  { %v541_v6 = vsub.f32 %v530_v53, %v540_v3  ;;  %v566_v7 = vadd.f32 %v565_v4, %v564_v2  ;;  %v1157_v2 = vld [vmem:[#allocation6 + $0x28] sm:$0xff] }
 0x2c7   :  { %804 = vmatpush.bf16.msrb.mxu2 %v1157_v2 }
 0x2c8   :  { %v542_v10 = vmul.f32 %v541_v6, %v541_v6  ;;  %v567_v11 = vrot.slane %v566_v7, 1 }
 0x2ca   :  { %v543_v12 = vrot.slane %v542_v10, 4  ;;  %v568_v13 = vadd.f32 %v567_v11, %v566_v7  ;;  %v1156_v7 = vld [vmem:[#allocation6 + $0x20] sm:$0xff] }
 0x2cb   :  { %805 = vmatpush.bf16.msrb.mxu2 %v1156_v7 }
 0x2cc   :  { %v544_v15 = vadd.f32 %v543_v12, %v542_v10  ;;  %v569_v16 = vmul.f32 %v568_v13, %v1437_v33  ;;  %v1155_v13 = vld [vmem:[#allocation6 + $0x18] sm:$0xff] }
 0x2ce   :  { %v545_v17 = vrot.slane %v544_v15, 2  ;;  %v570_v18 = vsub.f32 %v532_v61, %v569_v16 }
 0x2cf   :  { %806 = vmatpush.bf16.msrb.mxu2 %v1155_v13 }
 0x2d0   :  { %v546_v20 = vadd.f32 %v545_v17, %v544_v15  ;;  %v571_v21 = vmul.f32 %v570_v18, %v570_v18 }
 0x2d2   :  { %v547_v22 = vrot.slane %v546_v20, 1  ;;  %v572_v23 = vrot.slane %v571_v21, 4 }
 0x2d4   :  { %v548_v25 = vadd.f32 %v547_v22, %v546_v20  ;;  %v573_v26 = vadd.f32 %v572_v23, %v571_v21  ;;  %v1153_v23 = vld [vmem:[#allocation6 + $0x8] sm:$0xff] }
 0x2d6   :  { %v549_v27 = vmul.f32 %v548_v25, %v1437_v33  ;;  %v574_v28 = vrot.slane %v573_v26, 2 }
 0x2d8   :  { %v575_v29 = vadd.f32 %v574_v28, %v573_v26  ;;  %v550_v30 = vadd.f32 1e-05, %v549_v27  ;;  %v1152_v28 = vld [vmem:[#allocation6] sm:$0xff] }
 0x2da   :  { %v576_v31 = vrot.slane %v575_v29, 1  ;;  %1186 = vrsqrt.f32 %v550_v30  ;;  %vm557_vm8 = vweird.f32 %v550_v30 }
 0x2dc   :  { %v577_v32 = vadd.f32 %v576_v31, %v575_v29 }
 0x2de   :  { %v578_v34 = vmul.f32 %v577_v32, %v1437_v33 }
 0x2e0   :  { %v1187_v35 = vpop.eup %1186  ;;  %v579_v36 = vadd.f32 1e-05, %v578_v34 }
 0x2e1   :  { %v552_v37 = vmul.f32 %v1187_v35, %v550_v30  ;;  %vm558_vm7 = vweird.f32 %v1187_v35 }
 0x2e2   :  { %1188 = vrsqrt.f32 %v579_v36  ;;  %vm559_vm9 = vmor %vm557_vm8, %vm558_vm7  ;;  %vm586_vm11 = vweird.f32 %v579_v36 }
 0x2e3   :  { %v553_v38 = vmul.f32 %v1187_v35, %v552_v37 }
 0x2e5   :  { %v554_v39 = vmul.f32 0.5, %v553_v38 }
 0x2e7   :  { %v555_v40 = vsub.f32 1.5, %v554_v39 }
 0x2e8   :  { %v1189_v41 = vpop.eup %1188 }
 0x2e9   :  { %v581_v42 = vmul.f32 %v1189_v41, %v579_v36  ;;  %v556_v43 = vmul.f32 %v1187_v35, %v555_v40  ;;  %vm587_vm10 = vweird.f32 %v1189_v41 }
 0x2ea   :  { %vm588_vm12 = vmor %vm586_vm11, %vm587_vm10 }
 0x2eb   :  { %v582_v44 = vmul.f32 %v1189_v41, %v581_v42  ;;  %v560_v46 = vsel %vm559_vm9, %v1187_v35, %v556_v43 }
 0x2ec   :  { %v561_v49 = vmul.f32 %v560_v46, %v541_v6 }
 0x2ed   :  { %v583_v45 = vmul.f32 0.5, %v582_v44 }
 0x2ee   :  { %v562_v52 = vmax.f32 %v561_v49, 0.0 }
 0x2ef   :  { %v584_v47 = vsub.f32 1.5, %v583_v45 }
 0x2f1   :  { %v585_v48 = vmul.f32 %v1189_v41, %v584_v47 }
 0x2f3   :  { %v589_v50 = vsel %vm588_vm12, %v1189_v41, %v585_v48 }
 0x2f4   :  { %v590_v51 = vmul.f32 %v589_v50, %v570_v18  ;;  %v1154_v18 = vld [vmem:[#allocation6 + $0x10] sm:$0xff] }
 0x2f5   :  { %807 = vmatpush.bf16.msrb.mxu2 %v1154_v18 }
 0x2f6   :  { %v591_v53 = vmax.f32 %v590_v51, 0.0 }
 0x2f8   :  { %v592_v54 = vpack.c.bf16 %v591_v53, %v562_v52 }
 0x2f9   :  { %808 = vmatpush.bf16.msrb.mxu2 %v1153_v23 }
 0x2fa   :  { %669 = vmatmul.bf16.vlgmr.msrb.gmra.mxu1 %v592_v54 }
 0x2fd   :  { %809 = vmatpush.bf16.msrb.mxu2 %v1152_v28 }
 0x377   :  { %v670_v56 = vpop.f32.mrf.mxu1 }
 0x378   :  { %v671_v57 = vadd.f32 %v1174_v55, %v670_v56 }
 0x37a   :  { %v675_v58 = vrot.slane %v671_v57, 4 }
 0x37c   :  { %v676_v60 = vadd.f32 %v675_v58, %v671_v57  ;;  %v1175_v58 = vld [vmem:[%s1611_s12] ss:$0 sm:$0xff]  ;;  %s1161_s12 = spop %1160 }
 0x37d   :  { %s832_s0 = smul.f32 -0.5, %s1161_s12 }
 0x37e   :  { %v677_v61 = vrot.slane %v676_v60, 2 }
 0x37f   :  { %v672_v62 = vpop.f32.mrf.mxu1 }
 0x380   :  { %v678_v0 = vadd.f32 %v677_v61, %v676_v60  ;;  %v673_v1 = vadd.f32 %v1174_v55, %v672_v62 }
 0x382   :  { %v679_v3 = vrot.slane %v678_v0, 1  ;;  %v704_v4 = vrot.slane %v673_v1, 4 }
 0x384   :  { %v680_v5 = vadd.f32 %v679_v3, %v678_v0  ;;  %v705_v6 = vadd.f32 %v704_v4, %v673_v1 }
 0x386   :  { %v681_v9 = vmul.f32 %v680_v5, %v1437_v33  ;;  %v706_v10 = vrot.slane %v705_v6, 2 }
 0x388   :  { %v682_v11 = vsub.f32 %v671_v57, %v681_v9  ;;  %v707_v12 = vadd.f32 %v706_v10, %v705_v6 }
 0x38a   :  { %v683_v14 = vmul.f32 %v682_v11, %v682_v11  ;;  %v708_v15 = vrot.slane %v707_v12, 1 }
 0x38c   :  { %v684_v16 = vrot.slane %v683_v14, 4  ;;  %v709_v17 = vadd.f32 %v708_v15, %v707_v12 }
 0x38e   :  { %v685_v19 = vadd.f32 %v684_v16, %v683_v14  ;;  %v710_v20 = vmul.f32 %v709_v17, %v1437_v33 }
 0x390   :  { %v686_v21 = vrot.slane %v685_v19, 2  ;;  %v711_v22 = vsub.f32 %v673_v1, %v710_v20 }
 0x392   :  { %v687_v24 = vadd.f32 %v686_v21, %v685_v19  ;;  %v712_v25 = vmul.f32 %v711_v22, %v711_v22 }
 0x394   :  { %v688_v26 = vrot.slane %v687_v24, 1  ;;  %v713_v27 = vrot.slane %v712_v25, 4 }
 0x396   :  { %v689_v29 = vadd.f32 %v688_v26, %v687_v24  ;;  %v714_v30 = vadd.f32 %v713_v27, %v712_v25 }
 0x398   :  { %v690_v31 = vmul.f32 %v689_v29, %v1437_v33  ;;  %v715_v32 = vrot.slane %v714_v30, 2 }
 0x39a   :  { %v716_v34 = vadd.f32 %v715_v32, %v714_v30  ;;  %v691_v35 = vadd.f32 1e-05, %v690_v31 }
 0x39c   :  { %v717_v36 = vrot.slane %v716_v34, 1  ;;  %1190 = vrsqrt.f32 %v691_v35  ;;  %vm698_vm14 = vweird.f32 %v691_v35 }
 0x39e   :  { %v718_v37 = vadd.f32 %v717_v36, %v716_v34 }
 0x3a0   :  { %v719_v38 = vmul.f32 %v718_v37, %v1437_v33 }
 0x3a2   :  { %v1191_v39 = vpop.eup %1190  ;;  %v720_v40 = vadd.f32 1e-05, %v719_v38 }
 0x3a3   :  { %v693_v41 = vmul.f32 %v1191_v39, %v691_v35  ;;  %vm699_vm13 = vweird.f32 %v1191_v39 }
 0x3a4   :  { %1192 = vrsqrt.f32 %v720_v40  ;;  %vm700_vm15 = vmor %vm698_vm14, %vm699_vm13  ;;  %vm727_vm1 = vweird.f32 %v720_v40 }
 0x3a5   :  { %v694_v42 = vmul.f32 %v1191_v39, %v693_v41 }
 0x3a7   :  { %v695_v43 = vmul.f32 0.5, %v694_v42 }
 0x3a9   :  { %v696_v44 = vsub.f32 1.5, %v695_v43 }
 0x3aa   :  { %v1193_v45 = vpop.eup %1192 }
 0x3ab   :  { %v722_v46 = vmul.f32 %v1193_v45, %v720_v40  ;;  %v697_v47 = vmul.f32 %v1191_v39, %v696_v44  ;;  %vm728_vm0 = vweird.f32 %v1193_v45 }
 0x3ac   :  { %vm729_vm2 = vmor %vm727_vm1, %vm728_vm0 }
 0x3ad   :  { %v723_v48 = vmul.f32 %v1193_v45, %v722_v46  ;;  %v701_v50 = vsel %vm700_vm15, %v1191_v39, %v697_v47 }
 0x3ae   :  { %v702_v33 = vmul.f32 %v701_v50, %v682_v11 }
 0x3af   :  { %v724_v49 = vmul.f32 0.5, %v723_v48 }
 0x3b0   :  { %v703_v55 = vmax.f32 %v702_v33, 0.0 }
 0x3b1   :  { %v725_v51 = vsub.f32 1.5, %v724_v49 }
 0x3b3   :  { %v726_v52 = vmul.f32 %v1193_v45, %v725_v51 }
 0x3b5   :  { %v730_v53 = vsel %vm729_vm2, %v1193_v45, %v726_v52 }
 0x3b6   :  { %v731_v54 = vmul.f32 %v730_v53, %v711_v22 }
 0x3b8   :  { %v732_v56 = vmax.f32 %v731_v54, 0.0 }
 0x3ba   :  { %v733_v57 = vpack.c.bf16 %v732_v56, %v703_v55 }
 0x3bc   :  { %810 = vmatmul.bf16.vlgmr.msrb.gmra.mxu2 %v733_v57 }
 0x43f   :  { %v811_v59 = vpop.f32.mrf.mxu2 }
 0x440   :  { %v812_v60 = vadd.f32 %v1175_v58, %v811_v59 }
 0x442   :  { %816 = vst [vmem:[#allocation8] sm:$0xff] %v812_v60 }
 0x443   :  { %857 = dma.vmem_to_hbm [thread:$0]  %s853_s9, 128, %s855_s17, [#allocation4]  }
 0x447   :  { %v813_v61 = vpop.f32.mrf.mxu2 }
 0x448   :  { %v814_v62 = vadd.f32 %v1175_v58, %v813_v61 }
 0x44a   :  { %v833_v63 = vsub.f32 %v814_v62, %v1406_v8 }
 0x44c   :  { %v834_v0 = vmul.f32 %v833_v63, %v833_v63 }
 0x44e   :  { %835 = vadd.xlane.f32.xlu0 %v834_v0 }
 0x4c1   :  { %v836_v1 = vpop.xlane.xlu0 %835 }
 0x4c2   :  { %v837_v2 = vrot.slane %v836_v1, 4 }
 0x4c4   :  { %v838_v3 = vadd.f32 %v837_v2, %v836_v1 }
 0x4c6   :  { %v839_v4 = vrot.slane %v838_v3, 2 }
 0x4c8   :  { %v840_v5 = vadd.f32 %v839_v4, %v838_v3 }
 0x4ca   :  { %v841_v6 = vrot.slane %v840_v5, 1 }
 0x4cc   :  { %v842_v7 = vadd.f32 %v841_v6, %v840_v5 }
 0x4ce   :  { %1162 = vpush %v842_v7 }
 0x4ff   :  { %s1163_s19 = spop %1162 }
 0x500   :  { %s844_s20 = sadd.f32 %s1163_s19, %s832_s0 }
 0x502   :  { %846 = sst [smem:[#allocation9]] %s844_s20 }
 0x503   :  { %866 = dma.smem_to_hbm %s1292_s14, 16, %s864_s18, [#allocation5]  }
 0x504   :  { %1282 = dma.done.wait [#allocation4], 128  }
 0x505   :  { %1283 = vsyncadd [#allocation4], 4294967168 }
 0x506   :  { %1284 = dma.done.wait [#allocation5], 16  }
 0x507   :  { %1285 = vsyncadd [#allocation5], 4294967280 }
 0x508   :  { %875 = sfence }
 0x509   :  { %876 = vsyncpa [#allocation3], 1 }
 0x50a   :  { %877 = vsyncpa [#allocation7], 1 }
 0x50b   :  { %878 = vsyncpa [#allocation4], 1 }
 0x50c   :  { %879 = vsyncpa [#allocation5], 1 }

</bundles_post_ra>
